<compile_context>
chip_gen: v7x
topology: tpu7x:2x2x1
jax: 0.10.0
libtpu: 0.0.40
codegen_flags: <defaults>
</compile_context>

<pallas_src>
import jax
import jax.numpy as jnp
from jax.experimental import pallas as pl
from jax.experimental.pallas import tpu as pltpu


def transition_forward(x_nchw, w_dw, w_pw, gamma, beta, run_mean, run_var,
                       eps=1e-5, block_n=1):
    """x_nchw: (N, C, H, W) float32.  Returns (N, Cout, H//2, W//2)."""
    N, C, H, W = x_nchw.shape
    Cout = w_pw.shape[0]
    assert H % 2 == 0 and W % 2 == 0, "example restricted to even spatial dims"
    assert N % block_n == 0
    Ho, Wo = H // 2, W // 2
    HW, HWo = H * W, Ho * Wo

    # Fold depthwise scale and BN scale into the pointwise weight (all linear):
    #   w_eff[co, c] = w_pw[co, c] * w_dw[c] * gamma[co] / sqrt(var[co] + eps)
    # Kept channel-major (Cout, C) so the kernel never transposes.
    inv_std = 1.0 / jnp.sqrt(run_var + eps)
    bn_scale = gamma * inv_std                                     # (Cout,)
    w_eff = (w_pw * w_dw[None, :]) * bn_scale[:, None]             # (Cout, C)
    shift = (beta - run_mean * bn_scale).reshape(Cout, 1)          # (Cout, 1)

    # 2x2 average pool as a matmul: pool_mat[h*W + w, ho*Wo + wo] = 0.25 iff
    # (h//2, w//2) == (ho, wo).  The 1/4 normalization is folded in here.
    hw = jnp.arange(HW)
    h_idx, w_idx = hw // W, hw % W
    dst = (h_idx // 2) * Wo + (w_idx // 2)                         # (HW,)
    pool_mat = 0.25 * (dst[:, None] == jnp.arange(HWo)[None, :]).astype(jnp.float32)

    # Contiguous (free) reshape only — no HBM transpose of the input.
    x_flat = x_nchw.reshape(N, C, HW)                              # (N, C, H*W)

    def kernel(x_ref, w_ref, shift_ref, pool_ref, o_ref):
        # x_ref:     (block_n, C, H*W)
        # w_ref:     (Cout, C)       folded pointwise weight (channel-major)
        # shift_ref: (Cout, 1)       folded BN shift
        # pool_ref:  (H*W, Ho*Wo)    0.25-weighted 2x2 pooling matrix
        # o_ref:     (block_n, Cout, Ho*Wo)  NCHW-flat output slab
        for n in range(block_n):  # static unroll (block_n is small)
            # Channel-major matmul: (Cout, C) @ (C, HW) -> (Cout, HW).  MXU.
            y = jnp.dot(w_ref[...], x_ref[n],
                        preferred_element_type=jnp.float32)
            # BN shift + ReLU (VPU), lane axis stays HW (multiple of 128).
            y = jnp.maximum(y + shift_ref[...], 0.0)
            # 2x2 avg-pool as a second matmul: (Cout, HW) @ (HW, Ho*Wo).  MXU.
            pooled = jnp.dot(y, pool_ref[...],
                             preferred_element_type=jnp.float32)
            o_ref[n] = pooled.astype(o_ref.dtype)

    out_flat = pl.pallas_call(
        kernel,
        out_shape=jax.ShapeDtypeStruct((N, Cout, HWo), x_nchw.dtype),
        grid_spec=pltpu.PrefetchScalarGridSpec(
            num_scalar_prefetch=0,
            grid=(N // block_n,),
            in_specs=[
                pl.BlockSpec((block_n, C, HW), lambda n: (n, 0, 0)),
                pl.BlockSpec((Cout, C), lambda n: (0, 0)),
                pl.BlockSpec((Cout, 1), lambda n: (0, 0)),
                pl.BlockSpec((HW, HWo), lambda n: (0, 0)),
            ],
            out_specs=pl.BlockSpec((block_n, Cout, HWo), lambda n: (n, 0, 0)),
        ),
        compiler_params=pltpu.CompilerParams(
            dimension_semantics=("parallel",)),
    )(x_flat, w_eff, shift, pool_mat)

    # Free contiguous reshape back to PyTorch NCHW.
    return out_flat.reshape(N, Cout, Ho, Wo)


def transition_reference(x_nchw, w_dw, w_pw, gamma, beta, run_mean, run_var,
                         eps=1e-5):
    """Pure-JAX reference matching the PyTorch forward (eval mode)."""
    z = x_nchw * w_dw[None, :, None, None]
    z = jnp.einsum('nchw,oc->nohw', z, w_pw)
    z = (z - run_mean[None, :, None, None]) / jnp.sqrt(run_var + eps)[None, :, None, None]
    z = gamma[None, :, None, None] * z + beta[None, :, None, None]
    z = jnp.maximum(z, 0.0)
    N, Co, H, W = z.shape
    z = z.reshape(N, Co, H // 2, 2, W // 2, 2).mean(axis=(3, 5))
    return z


if __name__ == "__main__":
    # Transition(nChannels=8, nOutChannels=16, use_dropout=False)
    N, C, H, W = 2, 8, 16, 16
    Cout = 16

    key = jax.random.PRNGKey(0)
    kx, kdw, kpw, kg, kb, km, kv = jax.random.split(key, 7)

    x = jax.random.normal(kx, (N, C, H, W), dtype=jnp.float32)
    # depthwise Conv2d(C, C, 1, groups=C, bias=False): weight (C,1,1,1) -> (C,)
    w_dw = jax.random.normal(kdw, (C,), dtype=jnp.float32) * 0.5
    # pointwise Conv2d(C, Cout, 1, bias=False): weight (Cout, C, 1, 1) -> (Cout, C)
    w_pw = jax.random.normal(kpw, (Cout, C), dtype=jnp.float32) * (1.0 / C) ** 0.5
    # BatchNorm2d(Cout) parameters / running stats (inference mode)
    gamma = 1.0 + 0.1 * jax.random.normal(kg, (Cout,), dtype=jnp.float32)
    beta = 0.1 * jax.random.normal(kb, (Cout,), dtype=jnp.float32)
    run_mean = 0.1 * jax.random.normal(km, (Cout,), dtype=jnp.float32)
    run_var = jnp.abs(jax.random.normal(kv, (Cout,), dtype=jnp.float32)) + 0.5

    out = transition_forward(x, w_dw, w_pw, gamma, beta, run_mean, run_var)
    out = jax.block_until_ready(out)

    ref = transition_reference(x, w_dw, w_pw, gamma, beta, run_mean, run_var)
    assert out.shape == (N, Cout, H // 2, W // 2), out.shape
    assert jnp.allclose(out, ref, atol=1e-4, rtol=1e-4), \
        float(jnp.max(jnp.abs(out - ref)))

    print("KERNEL_OK")
</pallas_src>

<mosaic_0001>
module attributes {stable_mosaic.version = 11 : i64} {
  func.func @kernel(%arg0: i32, %arg1: memref<1x8x256xf32, #tpu.memory_space<vmem>>, %arg2: memref<16x8xf32, #tpu.memory_space<vmem>>, %arg3: memref<16x1xf32, #tpu.memory_space<vmem>>, %arg4: memref<256x64xf32, #tpu.memory_space<vmem>>, %arg5: memref<1x16x64xf32, #tpu.memory_space<vmem>>) attributes {dimension_semantics = [#tpu.dimension_semantics<parallel>], iteration_bounds = array<i64: 2>, scalar_prefetch = 0 : i64, scratch_operands = 0 : i64, tpu.core_type = #tpu.core_type<tc>, window_params = [{transform_indices = @transform_0, window_bounds = array<i64: 1, 8, 256>}, {pipeline_mode = #tpu.pipeline_mode<synchronous>, transform_indices = @transform_1, window_bounds = array<i64: 16, 8>}, {pipeline_mode = #tpu.pipeline_mode<synchronous>, transform_indices = @transform_2, window_bounds = array<i64: 16, 1>}, {pipeline_mode = #tpu.pipeline_mode<synchronous>, transform_indices = @transform_3, window_bounds = array<i64: 256, 64>}, {transform_indices = @transform_4, window_bounds = array<i64: 1, 16, 64>}]} {
    %c0 = arith.constant 0 : index
    %c0_0 = arith.constant 0 : index
    %0 = vector.load %arg2[%c0, %c0_0] : memref<16x8xf32, #tpu.memory_space<vmem>>, vector<16x8xf32>
    %c0_1 = arith.constant 0 : index
    %c0_2 = arith.constant 0 : index
    %c0_3 = arith.constant 0 : index
    %1 = vector.load %arg1[%c0_1, %c0_2, %c0_3] : memref<1x8x256xf32, #tpu.memory_space<vmem>>, vector<1x8x256xf32>
    %2 = vector.shape_cast %1 : vector<1x8x256xf32> to vector<8x256xf32>
    %cst = arith.constant dense<0.000000e+00> : vector<16x256xf32>
    %3 = tpu.matmul %0, %2, %cst {dimension_numbers = #tpu.dot_dimension_numbers<[1], [0], [0], [1], [0, 0, 1, 1], [], []>} : vector<16x8xf32>, vector<8x256xf32>, vector<16x256xf32> -> vector<16x256xf32>
    %c0_4 = arith.constant 0 : index
    %c0_5 = arith.constant 0 : index
    %4 = vector.load %arg3[%c0_4, %c0_5] : memref<16x1xf32, #tpu.memory_space<vmem>>, vector<16x1xf32>
    %5 = vector.broadcast %4 : vector<16x1xf32> to vector<16x256xf32>
    %6 = arith.addf %3, %5 : vector<16x256xf32>
    %cst_6 = arith.constant 0.000000e+00 : f32
    %7 = vector.broadcast %cst_6 : f32 to vector<16x256xf32>
    %8 = arith.maximumf %6, %7 : vector<16x256xf32>
    %c0_7 = arith.constant 0 : index
    %c0_8 = arith.constant 0 : index
    %9 = vector.load %arg4[%c0_7, %c0_8] : memref<256x64xf32, #tpu.memory_space<vmem>>, vector<256x64xf32>
    %cst_9 = arith.constant dense<0.000000e+00> : vector<16x64xf32>
    %10 = tpu.matmul %8, %9, %cst_9 {dimension_numbers = #tpu.dot_dimension_numbers<[1], [0], [0], [1], [0, 0, 1, 1], [], []>} : vector<16x256xf32>, vector<256x64xf32>, vector<16x64xf32> -> vector<16x64xf32>
    %c0_10 = arith.constant 0 : index
    %c0_11 = arith.constant 0 : index
    %c0_12 = arith.constant 0 : index
    %11 = vector.load %arg5[%c0_10, %c0_11, %c0_12] : memref<1x16x64xf32, #tpu.memory_space<vmem>>, vector<1x16x64xf32>
    %12 = vector.shape_cast %11 : vector<1x16x64xf32> to vector<16x64xf32>
    %13 = vector.shape_cast %10 : vector<16x64xf32> to vector<1x16x64xf32>
    tpu.vector_store %arg5[%c0_10, %c0_11, %c0_12], %13 {strides = array<i32>} : memref<1x16x64xf32, #tpu.memory_space<vmem>>, vector<1x16x64xf32>,
    return
  }
  func.func @transform_0(%arg0: i32) -> (i32, i32, i32) {
    %c0_i32 = arith.constant 0 : i32
    %c0_i32_0 = arith.constant 0 : i32
    %c0_i32_1 = arith.constant 0 : i32
    return %arg0, %c0_i32, %c0_i32_0 : i32, i32, i32
  }
  func.func @transform_1(%arg0: i32) -> (i32, i32) {
    %c0_i32 = arith.constant 0 : i32
    %c0_i32_0 = arith.constant 0 : i32
    %c0_i32_1 = arith.constant 0 : i32
    return %c0_i32, %c0_i32_0 : i32, i32
  }
  func.func @transform_2(%arg0: i32) -> (i32, i32) {
    %c0_i32 = arith.constant 0 : i32
    %c0_i32_0 = arith.constant 0 : i32
    %c0_i32_1 = arith.constant 0 : i32
    return %c0_i32, %c0_i32_0 : i32, i32
  }
  func.func @transform_3(%arg0: i32) -> (i32, i32) {
    %c0_i32 = arith.constant 0 : i32
    %c0_i32_0 = arith.constant 0 : i32
    %c0_i32_1 = arith.constant 0 : i32
    return %c0_i32, %c0_i32_0 : i32, i32
  }
  func.func @transform_4(%arg0: i32) -> (i32, i32, i32) {
    %c0_i32 = arith.constant 0 : i32
    %c0_i32_0 = arith.constant 0 : i32
    %c0_i32_1 = arith.constant 0 : i32
    return %arg0, %c0_i32, %c0_i32_0 : i32, i32, i32
  }
}

</mosaic_0001>

<bundles_post_ra>
// kernel: tpu_custom_call.1
= control target key start
LH: loop header
LB: loop body
LE: loop exit
PB: predicated region body
PF: predicated region fallthrough
CT: control target
= control target key end

     0   :  { %9 = vsyncpa [#allocation3], 0  ;;  %s939_s0 = inlined_call_operand.vmem [shape: f32[2,8,256], index: 0, kind: input, shape index: {}]   ;;  %s940_s1 = inlined_call_operand.vmem [shape: f32[16,8], index: 1, kind: input, shape index: {}]   ;;  %s941_s2 = inlined_call_operand.vmem [shape: f32[16,1], index: 2, kind: input, shape index: {}]   ;;  %s942_s3 = inlined_call_operand.vmem [shape: f32[256,64], index: 3, kind: input, shape index: {}]   ;;  %s943_s4 = inlined_call_operand.hbm [shape: f32[2,16,64], index: 4, kind: output, shape index: {}]  }
   0x1   :  { %11 = vsyncpa [#allocation3 + $0x1], 0  ;;  %s726_s15 = smov 0   ;;  %s728_s16 = smov 0  }
   0x2   :  { %s730_s17 = smov 0   ;;  %s732_s18 = smov 0  }
   0x3 LB: > { %s747_s19 = sadd.s32 4294967295, %s694_s18   ;;  %s486_s20 = sadd.s32 4294967294, %s694_s18   ;;  %s694_s18 = sphi %s732_s18, %s949_s18   ;;  %s690_s17 = sphi %s730_s17, %s948_s17   ;;  %s686_s16 = sphi %s728_s16, %s947_s16   ;;  %s682_s15 = sphi %s726_s15, %s946_s15  }
   0x4   : > { %s751_s21 = sadd.s32 1, %s694_s18   ;;  %s113_s22 = sadd.s32 1, %s690_s17 }
   0x5   : > { %s110_s23 = ssub.s32 %s694_s18, %s751_s21  ;;  %p123_p0 = scmp.ne.s32.totalorder %s690_s17, %s686_s16 }
   0x6   : > { %p111_p1 = scmp.eq.s32.totalorder %s110_s23, 0  ;;  %p124_p2 = scmp.eq.s32.totalorder %s747_s19, 1 }
   0x7   : > { %p129_p3 = scmp.ne.s32.totalorder %s686_s16, %s682_s15  ;;  %p130_p4 = scmp.eq.s32.totalorder %s486_s20, 1 }
   0x8   : > { %s762_s24 = scalar_select %p111_p1, %s690_s17, %s113_s22  }
   0x9   : > { %p764_p5 = por %p124_p2, %p123_p0  ;;  %p768_p6 = por %p130_p4, %p129_p3 }
   0xa   : > { %p489_p7 = scmp.ge.s32.totalorder %s694_s18, 1  ;;  %p165_p8 = scmp.lt.s32.totalorder %s694_s18, 3 }
   0xc   : > { %p166_p9 = pnand %p489_p7, %p165_p8 }
   0xd   : > { %p191_p10 = scmp.lt.s32.totalorder (!%p166_p9), %s747_s19, 1  ;;  %v696_v0 = vmov (!%p166_p9), 0.0   ;;  %v697_v1 = vmov (!%p166_p9), 0   ;;  %v200_v2 = vld [vmem:[%s941_s2] sm:$0xff] (!%p166_p9)  ;;  %v317_v4 = vld [vmem:[%s942_s3 + $0x88] sm:$0xff] (!%p166_p9)  ;;  %v318_v9 = vld [vmem:[%s942_s3 + $0x90] sm:$0xff] (!%p166_p9) }
   0xe   : > { %169 = sbr.rel (%p166_p9) target bundleno = 480 (0x1e0), region = 36  ;;  %283 = vmatprep.mubr.f32.mxu0 (!%p166_p9), %v696_v0  ;;  %631 = vset.pattern.permute.xlu0 (!%p166_p9), %v697_v1  ;;  %v316_v3 = vld [vmem:[%s942_s3 + $0x80] sm:$0xff] (!%p166_p9)  ;;  %v301_v6 = vld [vmem:[%s942_s3 + $0x8] sm:$0xff] (!%p166_p9)  ;;  %v319_v10 = vld [vmem:[%s942_s3 + $0x98] sm:$0xff] (!%p166_p9)  ;;  %vm212_vm0 = vcmask (!%p166_p9), 64512   ;;  %s188_s10 = sand.u32 (!%p166_p9), 1, %s686_s16  }
   0xf   : > { %204 = vperm.xlu0 (!%p166_p9), %631, %v200_v2   ;;  %v300_v5 = vld [vmem:[%s942_s3] sm:$0xff] (!%p166_p9)  ;;  %v201_v7 = vld [vmem:[%s941_s2 + $0x8] sm:$0xff] (!%p166_p9)  ;;  %v540_v8 = vpack.c.bf16 (!%p166_p9), %v317_v4, %v316_v3  ;;  %v544_v13 = vpack.c.bf16 (!%p166_p9), %v319_v10, %v318_v9  ;;  %v302_v14 = vld [vmem:[%s942_s3 + $0x10] sm:$0xff] (!%p166_p9)  ;;  %s490_s11 = sshll.u32 (!%p166_p9), %s188_s10, 4  ;;  %vm407_vm1 = vcmask (!%p166_p9), 523264   ;;  %s501_s14 = sshll.u32 (!%p166_p9), %s747_s19, 8 }
  0x10   : > { %v542_v11 = vpack.c.bf16 (!%p166_p9), %v301_v6, %v300_v5  ;;  %v196_v12 = vld [vmem:[%s940_s1] sm:$0xff] (!%p166_p9)  ;;  %v303_v17 = vld [vmem:[%s942_s3 + $0x18] sm:$0xff] (!%p166_p9)  ;;  %v321_v19 = vld [vmem:[%s942_s3 + $0xa8] sm:$0xff] (!%p166_p9)  ;;  %s190_s12 = scalar_lea.vmem (!%p166_p9), [#allocation2], %s490_s11  ;;  %s896_s23 = scalar_lea.hbm (!%p166_p9), %s943_s4, %s501_s14 }
  0x11   : > { %572 = vmatprep.subr.bf16.mxu1 (!%p166_p9), %v540_v8  ;;  %v320_v18 = vld [vmem:[%s942_s3 + $0xa0] sm:$0xff] (!%p166_p9)  ;;  %v546_v20 = vpack.c.bf16 (!%p166_p9), %v303_v17, %v302_v14  ;;  %v197_v21 = vld [vmem:[%s940_s1 + $0x8] sm:$0xff] (!%p166_p9)  ;;  %v322_v25 = vld [vmem:[%s942_s3 + $0xb0] sm:$0xff] (!%p166_p9)  ;;  %s424_s13 = sshll.u32 (!%p166_p9), %s190_s12, 4  ;;  %s891_s13 = int_to_ptr.vmem [resolvable:$true] %s424_s13 }
  0x12   : > { %580 = vmatpush3.bf16.msra.mxu1 (!%p166_p9), %v542_v11  ;;  %v548_v22 = vpack.c.bf16 (!%p166_p9), %v321_v19, %v320_v18  ;;  %v304_v23 = vld [vmem:[%s942_s3 + $0x20] sm:$0xff] (!%p166_p9)  ;;  %v305_v24 = vld [vmem:[%s942_s3 + $0x28] sm:$0xff] (!%p166_p9)  ;;  %v323_v26 = vld [vmem:[%s942_s3 + $0xb8] sm:$0xff] (!%p166_p9)  ;;  %s632_s28 = scalar_lea.vmem (!%p166_p9), %s891_s13, 256 }
  0x13   : > { %209 = vperm.xlu0 (!%p166_p9), %631, %v201_v7   ;;  %573 = vmatprep.subr.bf16.mxu1 (!%p166_p9), %v544_v13  ;;  %v550_v27 = vpack.c.bf16 (!%p166_p9), %v305_v24, %v304_v23  ;;  %v552_v28 = vpack.c.bf16 (!%p166_p9), %v323_v26, %v322_v25  ;;  %v306_v29 = vld [vmem:[%s942_s3 + $0x30] sm:$0xff] (!%p166_p9)  ;;  %v307_v30 = vld [vmem:[%s942_s3 + $0x38] sm:$0xff] (!%p166_p9)  ;;  %v324_v31 = vld [vmem:[%s942_s3 + $0xc0] sm:$0xff] (!%p166_p9)  ;;  %p633_p11 = scmp.ne.s32.totalorder (!%p166_p9), %s891_s13, %s632_s28 }
  0x14   : > { %v325_v32 = vld [vmem:[%s942_s3 + $0xc8] sm:$0xff] (!%p166_p9)  ;;  %v554_v33 = vpack.c.bf16 (!%p166_p9), %v307_v30, %v306_v29  ;;  %v308_v35 = vld [vmem:[%s942_s3 + $0x40] sm:$0xff] (!%p166_p9)  ;;  %v326_v37 = vld [vmem:[%s942_s3 + $0xd0] sm:$0xff] (!%p166_p9) }
  0x15   : > { %s192_s5 = scalar_select %p191_p10, %s747_s19, 1  ;;  %v556_v34 = vpack.c.bf16 %v325_v32, %v324_v31  ;;  %v309_v36 = vld [vmem:[%s942_s3 + $0x48] sm:$0xff]  ;;  %v327_v38 = vld [vmem:[%s942_s3 + $0xd8] sm:$0xff]  ;;  %v310_v41 = vld [vmem:[%s942_s3 + $0x50] sm:$0xff] }
  0x16   : > { %581 = vmatpush3.bf16.msra.mxu1 %v546_v20  ;;  %v558_v39 = vpack.c.bf16 %v309_v36, %v308_v35  ;;  %v560_v40 = vpack.c.bf16 %v327_v38, %v326_v37  ;;  %v311_v42 = vld [vmem:[%s942_s3 + $0x58] sm:$0xff]  ;;  %v328_v43 = vld [vmem:[%s942_s3 + $0xe0] sm:$0xff]  ;;  %v329_v44 = vld [vmem:[%s942_s3 + $0xe8] sm:$0xff]  ;;  %p634_p12 = pnand %p633_p11, %p764_p5  ;;  %s698_s19 = smov [#allocation2]  }
  0x17   : > { %s500_s27 = sshll.u32 %s192_s5, 4  ;;  %574 = vmatprep.subr.bf16.mxu1 %v548_v22  ;;  %v562_v45 = vpack.c.bf16 %v311_v42, %v310_v41  ;;  %v564_v46 = vpack.c.bf16 %v329_v44, %v328_v43  ;;  %v312_v47 = vld [vmem:[%s942_s3 + $0x60] sm:$0xff]  ;;  %v313_v48 = vld [vmem:[%s942_s3 + $0x68] sm:$0xff]  ;;  %v330_v50 = vld [vmem:[%s942_s3 + $0xf0] sm:$0xff]  ;;  %s636_s29 = sshll.u32 %s698_s19, 4  ;;  %s637_s29 = int_to_ptr.vmem [resolvable:$false] %s636_s29 }
  0x18   : > { %s195_s30 = scalar_lea.vmem %s939_s0, %s500_s27  ;;  %v566_v49 = vpack.c.bf16 %v313_v48, %v312_v47  ;;  %v331_v51 = vld [vmem:[%s942_s3 + $0xf8] sm:$0xff]  ;;  %v314_v53 = vld [vmem:[%s942_s3 + $0x70] sm:$0xff]  ;;  %s898_s27 = scalar_lea.sflag [#allocation3], %s188_s10 }
  0x19   : > { %v199_v15 = vld [vmem:[%s195_s30 + $0x8] sm:$0xff]  ;;  %v198_v16 = vld [vmem:[%s195_s30] sm:$0xff]  ;;  %v568_v52 = vpack.c.bf16 %v331_v51, %v330_v50  ;;  %v315_v54 = vld [vmem:[%s942_s3 + $0x78] sm:$0xff]  ;;  %p635_p13 = pneg %p634_p12  ;;  %s638_s30 = scalar_lea.vmem %s637_s29, 512 }
  0x1a   : > { %219 = vmatprep.subr.mxu0 %v199_v15  ;;  %582 = vmatpush3.bf16.msra.mxu1 %v550_v27  ;;  %v570_v55 = vpack.c.bf16 %v315_v54, %v314_v53  ;;  %p639_p0 = scmp.lt.s32.totalorder %s891_s13, %s637_s29  ;;  %p640_p1 = scmp.lt.s32.totalorder %s638_s30, %s632_s28 }
  0x1b   : > { %220 = vmatpush1.msra.mxu0 %v198_v16  ;;  %575 = vmatprep.subr.bf16.mxu1 %v552_v28 }
  0x1c   : > { %493 = vmatmul.mubr.msk.f32.vlgmr.msra.gmra.mrb[0].mxu0 %vm212_vm0, %v196_v12  ;;  %541 = vmatprep.subr.bf16.mxu0 %v540_v8  ;;  %p641_p2 = por %p640_p1, %p639_p0 }
  0x1d   : > { %289 = vmatprep.mubr.f32.mxu0 %v696_v0  ;;  %543 = vmatpush3.bf16.msra.mxu0 %v542_v11 }
  0x1e   : > { %545 = vmatprep.subr.bf16.mxu0 %v544_v13  ;;  %583 = vmatpush3.bf16.msra.mxu1 %v554_v33  ;;  %p642_p3 = pnand %p641_p2, %p635_p13 }
  0x1f   : > { %576 = vmatprep.subr.bf16.mxu1 %v556_v34 }
  0x20   : > { %494 = vmatmul.mubr.msk.f32.gmra.mrb[2].mxu0 %vm212_vm0, %v197_v21 }
  0x21   : > { %547 = vmatpush3.bf16.msra.mxu0 %v546_v20 }
  0x22   : > { %549 = vmatprep.subr.bf16.mxu0 %v548_v22  ;;  %584 = vmatpush3.bf16.msra.mxu1 %v558_v39 }
  0x23   : > { %577 = vmatprep.subr.bf16.mxu1 %v560_v40 }
  0x25   : > { %551 = vmatpush3.bf16.msra.mxu0 %v550_v27 }
  0x26   : > { %553 = vmatprep.subr.bf16.mxu0 %v552_v28  ;;  %585 = vmatpush3.bf16.msra.mxu1 %v562_v45 }
  0x27   : > { %578 = vmatprep.subr.bf16.mxu1 %v564_v46 }
  0x29   : > { %555 = vmatpush3.bf16.msra.mxu0 %v554_v33 }
  0x2a   : > { %557 = vmatprep.subr.bf16.mxu0 %v556_v34  ;;  %586 = vmatpush3.bf16.msra.mxu1 %v566_v49 }
  0x2b   : > { %579 = vmatprep.subr.bf16.mxu1 %v568_v52 }
  0x2d   : > { %559 = vmatpush3.bf16.msra.mxu0 %v558_v39 }
  0x2e   : > { %561 = vmatprep.subr.bf16.mxu0 %v560_v40  ;;  %587 = vmatpush3.bf16.msra.mxu1 %v570_v55 }
  0x31   : > { %563 = vmatpush3.bf16.msra.mxu0 %v562_v45 }
  0x32   : > { %565 = vmatprep.subr.bf16.mxu0 %v564_v46 }
  0x35   : > { %567 = vmatpush3.bf16.msra.mxu0 %v566_v49 }
  0x36   : > { %569 = vmatprep.subr.bf16.mxu0 %v568_v52 }
  0x39   : > { %571 = vmatpush3.bf16.msra.mxu0 %v570_v55 }
  0x8e   : > { %v205_v56 = vpop.permute.xlu0 %204 }
  0x92   : > { %v210_v61 = vpop.permute.xlu0 %209 }
  0xef   : > { %v285_v57 = vpop.f32.mrb[0].mxu0 }
  0xf0   : > { %v286_v58 = vadd.f32 %v285_v57, %v205_v56  ;;  %v287_v59 = vpop.f32.mrb[1].mxu0 }
  0xf1   : > { %v288_v60 = vadd.f32 %v287_v59, %v205_v56 }
  0xf2   : > { %v296_v0 = vmax.f32 %v286_v58, 0.0 }
  0xf3   : > { %v297_v62 = vmax.f32 %v288_v60, 0.0  ;;  %v291_v63 = vpop.f32.mrb[2].mxu0 }
  0xf4   : > { %v292_v1 = vadd.f32 %v291_v63, %v210_v61  ;;  %v293_v2 = vpop.f32.mrb[3].mxu0 }
  0xf5   : > { %396 = vmatprep.mubr.f32.mxu0 %v297_v62  ;;  %v294_v3 = vadd.f32 %v293_v2, %v210_v61 }
  0xf6   : > { %397 = vmatmul.mubr.f32.vlgmr.msra.gmra.mrb[4].mxu0 %v296_v0  ;;  %v298_v5 = vmax.f32 %v292_v1, 0.0 }
  0xf7   : > { %v299_v4 = vmax.f32 %v294_v3, 0.0 }
  0xf9   : > { %401 = vmatprep.mubr.f32.mxu1 %v299_v4 }
  0xfa   : > { %402 = vmatmul.mubr.f32.vlgmr.msra.gmra.mrb[0].mxu1 %v298_v5 }
 0x1c9   : > { %v534_v6 = vpop.f32.mrb[4].mxu0 }
 0x1ca   : > { %v535_v7 = vpop.f32.mrb[5].mxu0 }
 0x1cb   : > { %v536_v8 = vadd.f32 %v535_v7, %v534_v6 }
 0x1cd   : > { %408 = vst.msk [vmem:[%s190_s12] sm:$0xff] %vm407_vm1, %v536_v8  ;;  %v537_v9 = vpop.f32.mrb[0].mxu1 }
 0x1ce   : > { %v538_v10 = vpop.f32.mrb[1].mxu1 }
 0x1cf   : > { %v539_v11 = vadd.f32 %v538_v10, %v537_v9 }
 0x1d1   : > { %409 = vst.msk [vmem:[%s190_s12 + $0x8] sm:$0xff] %vm407_vm1, %v539_v11 }
 0x1d2   : > { %645 = shalt.err (!%p642_p3)
}
 0x1d3   : > { %s646_s6 = scalar_lea.hbm %s896_s23, 256  ;;  %s650_s9 = scalar_lea.hbm %s943_s4, 512 }
 0x1d4   : > { %p647_p4 = scmp.ne.s32.totalorder %s896_s23, %s646_s6  ;;  %p651_p9 = scmp.lt.u32.totalorder %s896_s23, %s943_s4 }
 0x1d5   : > { %p652_p10 = scmp.lt.u32.totalorder %s650_s9, %s646_s6  ;;  %p654_p12 = scmp.lt.u32.totalorder %s646_s6, %s896_s23 }
 0x1d6   : > { %p648_p7 = pnand %p647_p4, %p764_p5 }
 0x1d7   : > { %p653_p11 = por %p652_p10, %p651_p9 }
 0x1d8   : > { %p649_p8 = pneg %p648_p7 }
 0x1d9   : > { %p655_p13 = por %p654_p12, %p653_p11 }
 0x1db   : > { %p656_p0 = pnand %p655_p13, %p649_p8 }
 0x1dd   : > { %659 = shalt.err (!%p656_p0)
}
 0x1de   : > { %s699_s11 = smov 128   ;;  %s700_s12 = smov 8  }
 0x1df   : > { %588 = dma.vmem_to_hbm [thread:$0]  (%p764_p5), %s891_s13, 256, %s896_s23, %s898_s27, %s699_s11, %s699_s11, %s700_s12  }
 0x1e0 PF: > { %p594_p1 = scmp.ge.s32.totalorder %s694_s18, 2  ;;  %s439_s14 = sand.u32 1, %s682_s15  }
 0x1e1   : > { %s440_s20 = scalar_lea.sflag [#allocation3], %s439_s14 }
 0x1e2   : > { %p591_p2 = pnand %p594_p1, %p768_p6 }
 0x1e4   : > { %677 = dma.done.wait (!%p591_p2), %s440_s20, 256  }
 0x1e5   : > { %679 = vsyncadd (!%p591_p2), %s440_s20, 4294967040  ;;  %p14_p3 = scmp.ge.s32.totalorder %s751_s21, 4   ;;  %s946_s15 = smov %s686_s16 }
 0x1e6   : > { %s947_s16 = smov %s690_s17  ;;  %s948_s17 = smov %s762_s24 }
 0x1e7   : > { %s949_s18 = smov %s751_s21  ;;  %16 = sbr.rel (!%p14_p3) target bundleno = 3 (0x3), region = 71 }
 0x1ee   :  { %445 = vsyncpa [#allocation3], 1 }
 0x1ef   :  { %447 = vsyncpa [#allocation3 + $0x1], 1 }

</bundles_post_ra>
